<compile_context>
chip_gen: v5e
topology: v5e:2x2
jax: 0.10.0
libtpu: 0.0.40
codegen_flags: <defaults>
</compile_context>

<pallas_src>
import functools

import jax
import jax.numpy as jnp
from jax.experimental import pallas as pl
from jax.experimental.pallas import tpu as pltpu


# ----------------------------------------------------------------------------
# Tiling helpers
# ----------------------------------------------------------------------------
def _round_up(x, m):
    return ((x + m - 1) // m) * m


def _choose_tm(n, h):
    """Largest row tile (multiple of 8, <= 1024) whose double-buffered x tile
    (2 * tm * H * 4B) stays within ~16 MiB — safe on v7x (64 MiB VMEM) as well
    as v5e/v6e (128 MiB)."""
    cap = max(8, (((16 << 20) // (8 * max(h, 1))) // 8) * 8)
    return max(8, min(1024, cap, _round_up(n, 8)))


def _vmem_limit_bytes(tm, h, l):
    # 2x-buffered x, weight, bias, targets, logits out, stats out (+ headroom).
    need = 4 * (2 * tm * h + 2 * h * l + 2 * l + 2 * tm + 2 * tm * l + 2 * 128)
    return int(min(max(2 * need, 32 << 20), 64 << 20))


# ----------------------------------------------------------------------------
# Kernel 1: logits only  (targets is None)
# ----------------------------------------------------------------------------
def _linear_kernel(x_ref, w_ref, b_ref, o_ref):
    # x_ref: (tm, H), w_ref: (H, L), b_ref: (1, L), o_ref: (tm, L)
    acc = jnp.dot(x_ref[...], w_ref[...], preferred_element_type=jnp.float32)
    o_ref[...] = (acc + b_ref[...].astype(jnp.float32)).astype(o_ref.dtype)


# ----------------------------------------------------------------------------
# Kernel 2: fused logits + masked cross-entropy / accuracy partial sums
# ----------------------------------------------------------------------------
def _fused_kernel(x_ref, w_ref, b_ref, t_ref, o_ref, stats_ref,
                  *, ignore_index, num_labels):
    # x_ref: (tm, H), w_ref: (H, L), b_ref: (1, L), t_ref: (tm, 1)
    # o_ref: (tm, L), stats_ref: (1, 1, 128)  [lane 0: loss, 1: correct, 2: valid]
    acc = jnp.dot(x_ref[...], w_ref[...], preferred_element_type=jnp.float32)
    logits = acc + b_ref[...].astype(jnp.float32)               # (tm, L) f32
    o_ref[...] = logits.astype(o_ref.dtype)

    tgt = t_ref[...]                                            # (tm, 1) int32
    valid = (tgt != ignore_index).astype(jnp.float32)           # (tm, 1)

    lab_iota = jax.lax.broadcasted_iota(jnp.int32, logits.shape, 1)
    onehot = (lab_iota == tgt).astype(jnp.float32)              # (tm, L)

    # log-softmax cross entropy: lse(logits) - logits[target]
    m = jnp.max(logits, axis=-1, keepdims=True)
    lse = m + jnp.log(jnp.sum(jnp.exp(logits - m), axis=-1, keepdims=True))
    tgt_logit = jnp.sum(logits * onehot, axis=-1, keepdims=True)
    loss_i = (lse - tgt_logit) * valid                          # (tm, 1)

    # argmax (first index achieving the max) for accuracy
    pred = jnp.min(jnp.where(logits == m, lab_iota, num_labels),
                   axis=-1, keepdims=True)                      # (tm, 1) int32
    correct_i = (pred == tgt).astype(jnp.float32) * valid

    loss_sum = jnp.sum(loss_i)
    correct_sum = jnp.sum(correct_i)
    valid_sum = jnp.sum(valid)

    lane = jax.lax.broadcasted_iota(jnp.int32, (1, 1, 128), 2)
    stats_ref[...] = (jnp.where(lane == 0, loss_sum, 0.0)
                      + jnp.where(lane == 1, correct_sum, 0.0)
                      + jnp.where(lane == 2, valid_sum, 0.0))


# ----------------------------------------------------------------------------
# pallas_call wrappers
# ----------------------------------------------------------------------------
def _logits_only(x_pad, weight, bias2d, tm):
    n_pad, h = x_pad.shape
    l = weight.shape[1]
    num_tiles = n_pad // tm
    return pl.pallas_call(
        _linear_kernel,
        out_shape=jax.ShapeDtypeStruct((n_pad, l), jnp.float32),
        grid_spec=pltpu.PrefetchScalarGridSpec(
            num_scalar_prefetch=0,
            grid=(num_tiles,),
            in_specs=[
                pl.BlockSpec((tm, h), lambda i: (i, 0)),
                pl.BlockSpec((h, l), lambda i: (0, 0)),
                pl.BlockSpec((1, l), lambda i: (0, 0)),
            ],
            out_specs=pl.BlockSpec((tm, l), lambda i: (i, 0)),
        ),
        compiler_params=pltpu.CompilerParams(
            dimension_semantics=("parallel",),
            vmem_limit_bytes=_vmem_limit_bytes(tm, h, l)),
        cost_estimate=pl.CostEstimate(
            flops=2 * n_pad * h * l,
            transcendentals=0,
            bytes_accessed=4 * (n_pad * h + h * l + l + n_pad * l)),
    )(x_pad, weight, bias2d)


def _logits_and_stats(x_pad, weight, bias2d, tgt2d, tm, ignore_index):
    n_pad, h = x_pad.shape
    l = weight.shape[1]
    num_tiles = n_pad // tm
    kernel = functools.partial(_fused_kernel, ignore_index=ignore_index,
                               num_labels=l)
    logits_pad, stats = pl.pallas_call(
        kernel,
        out_shape=(jax.ShapeDtypeStruct((n_pad, l), jnp.float32),
                   jax.ShapeDtypeStruct((num_tiles, 1, 128), jnp.float32)),
        grid_spec=pltpu.PrefetchScalarGridSpec(
            num_scalar_prefetch=0,
            grid=(num_tiles,),
            in_specs=[
                pl.BlockSpec((tm, h), lambda i: (i, 0)),
                pl.BlockSpec((h, l), lambda i: (0, 0)),
                pl.BlockSpec((1, l), lambda i: (0, 0)),
                pl.BlockSpec((tm, 1), lambda i: (i, 0)),
            ],
            out_specs=(pl.BlockSpec((tm, l), lambda i: (i, 0)),
                       pl.BlockSpec((1, 1, 128), lambda i: (i, 0, 0))),
        ),
        compiler_params=pltpu.CompilerParams(
            dimension_semantics=("parallel",),
            vmem_limit_bytes=_vmem_limit_bytes(tm, h, l)),
        cost_estimate=pl.CostEstimate(
            flops=2 * n_pad * h * l + 6 * n_pad * l,
            transcendentals=n_pad * l + n_pad,
            bytes_accessed=4 * (n_pad * h + h * l + l + n_pad
                                + n_pad * l + num_tiles * 128)),
    )(x_pad, weight, bias2d, tgt2d)
    return logits_pad, stats


@functools.partial(jax.jit, static_argnames=("ignore_index", "use_bf16"))
def forward(sequence_output, weight, bias, targets=None, ignore_index=-100,
            use_bf16=False):
    """Reproduces LinearSequenceToSequenceClassificationHead.forward (eval mode).

    sequence_output: (B, S, H) float32
    weight: (H, L), bias: (L,)
    targets: optional (B, S) int32 with ignore_index entries masked out
    """
    B, S, H = sequence_output.shape
    L = weight.shape[1]
    N = B * S

    x = sequence_output.reshape(N, H)
    w = weight
    if use_bf16:
        # Optional bandwidth optimization: halves the dominant HBM read; MXU
        # accumulation stays f32 (preferred_element_type).
        x = x.astype(jnp.bfloat16)
        w = w.astype(jnp.bfloat16)
    bias2d = bias.reshape(1, L).astype(jnp.float32)

    tm = _choose_tm(N, H)
    n_pad = _round_up(N, tm)
    if n_pad != N:
        x = jnp.pad(x, ((0, n_pad - N), (0, 0)))

    if targets is None:
        logits_pad = _logits_only(x, w, bias2d, tm)
        return (logits_pad[:N].reshape(B, S, L),)

    tgt = targets.reshape(-1).astype(jnp.int32)
    if n_pad != N:
        # Padded rows get ignore_index so they contribute nothing to loss/acc.
        tgt = jnp.pad(tgt, (0, n_pad - N), constant_values=ignore_index)
    tgt2d = tgt.reshape(n_pad, 1)

    logits_pad, stats = _logits_and_stats(x, w, bias2d, tgt2d, tm, ignore_index)

    totals = jnp.sum(stats, axis=(0, 1))      # (128,)
    loss_sum, correct_sum, valid_sum = totals[0], totals[1], totals[2]
    # Note: if every target == ignore_index this yields NaN, matching PyTorch's
    # nn.CrossEntropyLoss behavior.
    mean_loss = loss_sum / valid_sum
    acc = correct_sum / valid_sum

    sequence_logits = logits_pad[:N].reshape(B, S, L)
    return ((mean_loss, {"accuracy": acc}), sequence_logits)


# ----------------------------------------------------------------------------
# Demo / self-check
# ----------------------------------------------------------------------------
if __name__ == "__main__":
    B, S, H, L = 2, 9, 32, 8      # N = 18 -> exercises the padded-tail path
    ignore_index = -100

    key = jax.random.PRNGKey(0)
    kx, kw, kb, kt = jax.random.split(key, 4)

    x = jax.random.normal(kx, (B, S, H), dtype=jnp.float32)
    # nn.Linear default init: U(-1/sqrt(H), 1/sqrt(H)); stored as (H, L)
    bound = 1.0 / jnp.sqrt(jnp.float32(H))
    weight = jax.random.uniform(kw, (H, L), jnp.float32, -bound, bound)
    bias = jax.random.uniform(kb, (L,), jnp.float32, -bound, bound)

    targets = jax.random.randint(kt, (B, S), 0, L, dtype=jnp.int32)
    # mark a few positions as ignored
    targets = targets.at[0, 0].set(ignore_index).at[1, 3].set(ignore_index)

    # --- with targets: fused logits + loss/accuracy -------------------------
    (loss_and_metrics, logits) = forward(x, weight, bias, targets,
                                         ignore_index=ignore_index)
    loss, metrics = loss_and_metrics
    jax.block_until_ready((loss, metrics["accuracy"], logits))

    # --- without targets: logits-only path ----------------------------------
    (logits_only,) = forward(x, weight, bias, targets=None)
    jax.block_until_ready(logits_only)

    # pure-JAX reference check
    ref_logits = x.reshape(-1, H) @ weight + bias
    tgt = targets.reshape(-1)
    valid = tgt != ignore_index
    logp = jax.nn.log_softmax(ref_logits, axis=-1)
    safe_tgt = jnp.where(valid, tgt, 0)
    nll = -jnp.take_along_axis(logp, safe_tgt[:, None], axis=-1)[:, 0]
    ref_loss = jnp.sum(nll * valid) / jnp.sum(valid)
    ref_acc = jnp.sum((jnp.argmax(ref_logits, -1) == tgt) * valid) / jnp.sum(valid)

    assert jnp.allclose(logits.reshape(-1, L), ref_logits, atol=1e-4, rtol=1e-4)
    assert jnp.allclose(logits_only.reshape(-1, L), ref_logits, atol=1e-4, rtol=1e-4)
    assert jnp.allclose(loss, ref_loss, atol=1e-4, rtol=1e-4)
    assert jnp.allclose(metrics["accuracy"], ref_acc, atol=1e-6)

    print("KERNEL_OK")
</pallas_src>

<mosaic_0001>
module attributes {stable_mosaic.version = 11 : i64} {
  func.func @_fused_kernel(%arg0: i32, %arg1: memref<24x32xf32, #tpu.memory_space<vmem>>, %arg2: memref<32x8xf32, #tpu.memory_space<vmem>>, %arg3: memref<1x8xf32, #tpu.memory_space<vmem>>, %arg4: memref<24x1xi32, #tpu.memory_space<vmem>>, %arg5: memref<24x8xf32, #tpu.memory_space<vmem>>, %arg6: memref<1x1x128xf32, #tpu.memory_space<vmem>>) attributes {dimension_semantics = [#tpu.dimension_semantics<parallel>], iteration_bounds = array<i64: 1>, scalar_prefetch = 0 : i64, scratch_operands = 0 : i64, tpu.core_type = #tpu.core_type<tc>, window_params = [{transform_indices = @transform_0, window_bounds = array<i64: 24, 32>}, {pipeline_mode = #tpu.pipeline_mode<synchronous>, transform_indices = @transform_1, window_bounds = array<i64: 32, 8>}, {pipeline_mode = #tpu.pipeline_mode<synchronous>, transform_indices = @transform_2, window_bounds = array<i64: 1, 8>}, {transform_indices = @transform_3, window_bounds = array<i64: 24, 1>}, {transform_indices = @transform_4, window_bounds = array<i64: 24, 8>}, {transform_indices = @transform_5, window_bounds = array<i64: 1, 1, 128>}]} {
    %c0 = arith.constant 0 : index
    %c0_0 = arith.constant 0 : index
    %0 = vector.load %arg1[%c0, %c0_0] : memref<24x32xf32, #tpu.memory_space<vmem>>, vector<24x32xf32>
    %c0_1 = arith.constant 0 : index
    %c0_2 = arith.constant 0 : index
    %1 = vector.load %arg2[%c0_1, %c0_2] : memref<32x8xf32, #tpu.memory_space<vmem>>, vector<32x8xf32>
    %cst = arith.constant dense<0.000000e+00> : vector<24x8xf32>
    %2 = tpu.matmul %0, %1, %cst {dimension_numbers = #tpu.dot_dimension_numbers<[1], [0], [0], [1], [0, 0, 1, 1], [], []>} : vector<24x32xf32>, vector<32x8xf32>, vector<24x8xf32> -> vector<24x8xf32>
    %c0_3 = arith.constant 0 : index
    %c0_4 = arith.constant 0 : index
    %3 = vector.load %arg3[%c0_3, %c0_4] : memref<1x8xf32, #tpu.memory_space<vmem>>, vector<1x8xf32>
    %4 = vector.broadcast %3 : vector<1x8xf32> to vector<24x8xf32>
    %5 = arith.addf %2, %4 : vector<24x8xf32>
    %c0_5 = arith.constant 0 : index
    %c0_6 = arith.constant 0 : index
    %6 = vector.load %arg5[%c0_5, %c0_6] : memref<24x8xf32, #tpu.memory_space<vmem>>, vector<24x8xf32>
    tpu.vector_store %arg5[%c0_5, %c0_6], %5 {strides = array<i32>} : memref<24x8xf32, #tpu.memory_space<vmem>>, vector<24x8xf32>,
    %c0_7 = arith.constant 0 : index
    %c0_8 = arith.constant 0 : index
    %7 = vector.load %arg4[%c0_7, %c0_8] : memref<24x1xi32, #tpu.memory_space<vmem>>, vector<24x1xi32>
    %c-100_i32 = arith.constant -100 : i32
    %8 = vector.broadcast %c-100_i32 : i32 to vector<24x1xi32>
    %9 = arith.cmpi ne, %7, %8 : vector<24x1xi32>
    %10 = arith.extui %9 : vector<24x1xi1> to vector<24x1xi32>
    %11 = arith.sitofp %10 : vector<24x1xi32> to vector<24x1xf32>
    %12 = tpu.iota {dimensions = array<i32: 1>} : vector<24x8xi32>
    %13 = vector.broadcast %7 : vector<24x1xi32> to vector<24x8xi32>
    %14 = arith.cmpi eq, %12, %13 : vector<24x8xi32>
    %15 = arith.extui %14 : vector<24x8xi1> to vector<24x8xi32>
    %16 = arith.sitofp %15 : vector<24x8xi32> to vector<24x8xf32>
    %cst_9 = arith.constant dense<0xFF800000> : vector<24xf32>
    %17 = vector.multi_reduction <maximumf>, %5, %cst_9 [1] : vector<24x8xf32> to vector<24xf32>
    %18 = vector.shape_cast %17 : vector<24xf32> to vector<24x1xf32>
    %19 = vector.broadcast %18 : vector<24x1xf32> to vector<24x8xf32>
    %20 = arith.subf %5, %19 : vector<24x8xf32>
    %21 = math.exp %20 : vector<24x8xf32>
    %cst_10 = arith.constant dense<0.000000e+00> : vector<24xf32>
    %22 = vector.multi_reduction <add>, %21, %cst_10 [1] : vector<24x8xf32> to vector<24xf32>
    %23 = vector.shape_cast %22 : vector<24xf32> to vector<24x1xf32>
    %24 = math.log %23 : vector<24x1xf32>
    %25 = arith.addf %18, %24 : vector<24x1xf32>
    %26 = arith.mulf %5, %16 : vector<24x8xf32>
    %cst_11 = arith.constant dense<0.000000e+00> : vector<24xf32>
    %27 = vector.multi_reduction <add>, %26, %cst_11 [1] : vector<24x8xf32> to vector<24xf32>
    %28 = vector.shape_cast %27 : vector<24xf32> to vector<24x1xf32>
    %29 = arith.subf %25, %28 : vector<24x1xf32>
    %30 = arith.mulf %29, %11 : vector<24x1xf32>
    %31 = vector.broadcast %18 : vector<24x1xf32> to vector<24x8xf32>
    %32 = arith.cmpf oeq, %5, %31 : vector<24x8xf32>
    %c8_i32 = arith.constant 8 : i32
    %33 = vector.broadcast %c8_i32 : i32 to vector<24x8xi32>
    %34 = arith.select %32, %12, %33 : vector<24x8xi1>, vector<24x8xi32>
    %cst_12 = arith.constant dense<2147483647> : vector<24xi32>
    %35 = vector.multi_reduction <minsi>, %34, %cst_12 [1] : vector<24x8xi32> to vector<24xi32>
    %36 = vector.shape_cast %35 : vector<24xi32> to vector<24x1xi32>
    %37 = arith.cmpi eq, %36, %7 : vector<24x1xi32>
    %38 = arith.extui %37 : vector<24x1xi1> to vector<24x1xi32>
    %39 = arith.sitofp %38 : vector<24x1xi32> to vector<24x1xf32>
    %40 = arith.mulf %39, %11 : vector<24x1xf32>
    %41 = vector.shape_cast %30 : vector<24x1xf32> to vector<1x24x1xf32>
    %cst_13 = arith.constant dense<0.000000e+00> : vector<1xf32>
    %42 = vector.multi_reduction <add>, %41, %cst_13 [1, 2] : vector<1x24x1xf32> to vector<1xf32>
    %43 = vector.shape_cast %42 : vector<1xf32> to vector<1x1x1xf32>
    %44 = vector.extract %43[0, 0, 0] : f32 from vector<1x1x1xf32>
    %45 = vector.shape_cast %40 : vector<24x1xf32> to vector<1x24x1xf32>
    %cst_14 = arith.constant dense<0.000000e+00> : vector<1xf32>
    %46 = vector.multi_reduction <add>, %45, %cst_14 [1, 2] : vector<1x24x1xf32> to vector<1xf32>
    %47 = vector.shape_cast %46 : vector<1xf32> to vector<1x1x1xf32>
    %48 = vector.extract %47[0, 0, 0] : f32 from vector<1x1x1xf32>
    %49 = vector.shape_cast %11 : vector<24x1xf32> to vector<1x24x1xf32>
    %cst_15 = arith.constant dense<0.000000e+00> : vector<1xf32>
    %50 = vector.multi_reduction <add>, %49, %cst_15 [1, 2] : vector<1x24x1xf32> to vector<1xf32>
    %51 = vector.shape_cast %50 : vector<1xf32> to vector<1x1x1xf32>
    %52 = vector.extract %51[0, 0, 0] : f32 from vector<1x1x1xf32>
    %53 = tpu.iota {dimensions = array<i32: 2>} : vector<1x1x128xi32>
    %c0_i32 = arith.constant 0 : i32
    %54 = vector.broadcast %c0_i32 : i32 to vector<1x1x128xi32>
    %55 = arith.cmpi eq, %53, %54 : vector<1x1x128xi32>
    %cst_16 = arith.constant 0.000000e+00 : f32
    %56 = vector.broadcast %44 : f32 to vector<1x1x128xf32>
    %57 = vector.broadcast %cst_16 : f32 to vector<1x1x128xf32>
    %58 = arith.select %55, %56, %57 : vector<1x1x128xi1>, vector<1x1x128xf32>
    %c1_i32 = arith.constant 1 : i32
    %59 = vector.broadcast %c1_i32 : i32 to vector<1x1x128xi32>
    %60 = arith.cmpi eq, %53, %59 : vector<1x1x128xi32>
    %cst_17 = arith.constant 0.000000e+00 : f32
    %61 = vector.broadcast %48 : f32 to vector<1x1x128xf32>
    %62 = vector.broadcast %cst_17 : f32 to vector<1x1x128xf32>
    %63 = arith.select %60, %61, %62 : vector<1x1x128xi1>, vector<1x1x128xf32>
    %64 = arith.addf %58, %63 : vector<1x1x128xf32>
    %c2_i32 = arith.constant 2 : i32
    %65 = vector.broadcast %c2_i32 : i32 to vector<1x1x128xi32>
    %66 = arith.cmpi eq, %53, %65 : vector<1x1x128xi32>
    %cst_18 = arith.constant 0.000000e+00 : f32
    %67 = vector.broadcast %52 : f32 to vector<1x1x128xf32>
    %68 = vector.broadcast %cst_18 : f32 to vector<1x1x128xf32>
    %69 = arith.select %66, %67, %68 : vector<1x1x128xi1>, vector<1x1x128xf32>
    %70 = arith.addf %64, %69 : vector<1x1x128xf32>
    %c0_19 = arith.constant 0 : index
    %c0_20 = arith.constant 0 : index
    %c0_21 = arith.constant 0 : index
    %71 = vector.load %arg6[%c0_19, %c0_20, %c0_21] : memref<1x1x128xf32, #tpu.memory_space<vmem>>, vector<1x1x128xf32>
    tpu.vector_store %arg6[%c0_19, %c0_20, %c0_21], %70 {strides = array<i32>} : memref<1x1x128xf32, #tpu.memory_space<vmem>>, vector<1x1x128xf32>,
    return
  }
  func.func @transform_0(%arg0: i32) -> (i32, i32) {
    %c0_i32 = arith.constant 0 : i32
    %c0_i32_0 = arith.constant 0 : i32
    return %arg0, %c0_i32 : i32, i32
  }
  func.func @transform_1(%arg0: i32) -> (i32, i32) {
    %c0_i32 = arith.constant 0 : i32
    %c0_i32_0 = arith.constant 0 : i32
    %c0_i32_1 = arith.constant 0 : i32
    return %c0_i32, %c0_i32_0 : i32, i32
  }
  func.func @transform_2(%arg0: i32) -> (i32, i32) {
    %c0_i32 = arith.constant 0 : i32
    %c0_i32_0 = arith.constant 0 : i32
    %c0_i32_1 = arith.constant 0 : i32
    return %c0_i32, %c0_i32_0 : i32, i32
  }
  func.func @transform_3(%arg0: i32) -> (i32, i32) {
    %c0_i32 = arith.constant 0 : i32
    %c0_i32_0 = arith.constant 0 : i32
    return %arg0, %c0_i32 : i32, i32
  }
  func.func @transform_4(%arg0: i32) -> (i32, i32) {
    %c0_i32 = arith.constant 0 : i32
    %c0_i32_0 = arith.constant 0 : i32
    return %arg0, %c0_i32 : i32, i32
  }
  func.func @transform_5(%arg0: i32) -> (i32, i32, i32) {
    %c0_i32 = arith.constant 0 : i32
    %c0_i32_0 = arith.constant 0 : i32
    %c0_i32_1 = arith.constant 0 : i32
    return %arg0, %c0_i32, %c0_i32_0 : i32, i32, i32
  }
}

</mosaic_0001>

<bundles_post_ra>
// kernel: forward.1
= control target key start
LH: loop header
LB: loop body
LE: loop exit
PB: predicated region body
PF: predicated region fallthrough
CT: control target
= control target key end

     0   :  { %vm30_vm0 = vcmask 261120   ;;  %v326_v7 = vmov 0   ;;  %vm66_vm1 = vcmask 64512   ;;  %v82_v19 = vlaneseq  ;;  %s498_s1 = inlined_call_operand.vmem [shape: f32[32,8], index: 1, kind: input, shape index: {}]   ;;  %s499_s2 = inlined_call_operand.vmem [shape: f32[1,8], index: 2, kind: input, shape index: {}]   ;;  %s500_s0 = inlined_call_operand.vmem [shape: f32[24,32], index: 0, kind: input, shape index: {}]   ;;  %s501_s4 = inlined_call_operand.vmem [shape: f32[24,8], index: 4, kind: output, shape index: {0}]   ;;  %s502_s3 = inlined_call_operand.vmem [shape: s32[24,1], index: 3, kind: input, shape index: {}]   ;;  %s503_s5 = inlined_call_operand.vmem [shape: f32[1,1,128], index: 5, kind: output, shape index: {1}]  }
   0x1   :  { %v25_v0 = vld [vmem:[%s498_s1 + $0x18] sm:$0xff]  ;;  %v24_v1 = vld [vmem:[%s498_s1 + $0x10] sm:$0xff]  ;;  %v23_v2 = vld [vmem:[%s498_s1 + $0x8] sm:$0xff]  ;;  %311 = vset.pattern.permute.xlu0 %v326_v7  ;;  %310 = vset.pattern.permute.xlu2 %v326_v7  ;;  %v327_v63 = vmov 0.0   ;;  %vm219_vm14 = vcmask 7168  }
   0x2   :  { %52 = vmatpush.msra.mxu0 %v25_v0  ;;  %295 = vmatpush.msra.mxu2 %v25_v0  ;;  %v22_v3 = vld [vmem:[%s498_s1] sm:$0xff]  ;;  %v21_v5 = vld [vmem:[%s500_s0 + $0x10] sm:$0xff]  ;;  %v20_v6 = vld [vmem:[%s500_s0 + $0x8] sm:$0xff]  ;;  %v415_v20 = vand.u32 127, %v82_v19 }
   0x3   :  { %294 = vmatpush.msra.mxu1 %v25_v0  ;;  %v19_v4 = vld [vmem:[%s500_s0] sm:$0xff]  ;;  %312 = vset.pattern.permute.xlu1 %v326_v7  ;;  %v412_v18 = vld [vmem:[%s502_s3 + $0x8] sm:$0xff]  ;;  %v446_v41 = vld [vmem:[%s502_s3 + $0x10] sm:$0xff] }
   0x4   :  { %53 = vmatpush.msra.mxu0 %v24_v1  ;;  %297 = vmatpush.msra.mxu2 %v24_v1  ;;  %v313_v8 = vld [vmem:[%s499_s2] ss:$0 sm:$0xff]  ;;  %vm74_vm11 = vcmp.ne.s32.totalorder %v412_v18, 4294967196  ;;  %vm75_vm13 = vcmp.ne.s32.totalorder %v446_v41, 4294967196 }
   0x5   :  { %296 = vmatpush.msra.mxu1 %v24_v1  ;;  %v441_v40 = vld [vmem:[%s502_s3] sm:$0xff]  ;;  %v286_v19 = vsel %vm74_vm11, 1.0, %v327_v63 }
   0x6   :  { %54 = vmatpush.msra.mxu0 %v23_v2  ;;  %299 = vmatpush.msra.mxu2 %v23_v2  ;;  %vm73_vm12 = vcmp.ne.s32.totalorder %v441_v40, 4294967196 }
   0x7   :  { %298 = vmatpush.msra.mxu1 %v23_v2 }
   0x8   :  { %55 = vmatpush.msra.mxu0 %v22_v3  ;;  %301 = vmatpush.msra.mxu2 %v22_v3 }
   0x9   :  { %282 = vmatmul.msk.f32.vlgmr.msra.gmra.mxu0 %vm30_vm0, %v19_v4  ;;  %284 = vmatmul.msk.f32.vlgmr.msra.gmra.mxu2 %vm30_vm0, %v21_v5 }
   0xa   :  { %300 = vmatpush.msra.mxu1 %v22_v3 }
   0xb   :  { %283 = vmatmul.msk.f32.vlgmr.msra.gmra.mxu1 %vm30_vm0, %v20_v6 }
  0x86   :  { %v57_v9 = vpop.f32.mrf.mxu0 }
  0x87   :  { %v382_v10 = vadd.f32 %v313_v8, %v57_v9 }
  0x88   :  { %v60_v11 = vpop.f32.mrf.mxu1 }
  0x89   :  { %67 = vst.msk [vmem:[%s501_s4] sm:$0xff] %vm66_vm1, %v382_v10  ;;  %v102_v12 = vsel %vm66_vm1, %v382_v10, -inf  ;;  %v391_v13 = vadd.f32 %v313_v8, %v60_v11 }
  0x8a   :  { %103 = vmax.xlane.f32.xlu0 %v102_v12 }
  0x8b   :  { %68 = vst.msk [vmem:[%s501_s4 + $0x8] sm:$0xff] %vm66_vm1, %v391_v13  ;;  %v105_v17 = vsel %vm66_vm1, %v391_v13, -inf }
  0x8c   :  { %v63_v14 = vpop.f32.mrf.mxu2 }
  0x8d   :  { %v398_v15 = vadd.f32 %v313_v8, %v63_v14 }
  0x8f   :  { %69 = vst.msk [vmem:[%s501_s4 + $0x10] sm:$0xff] %vm66_vm1, %v398_v15  ;;  %v108_v16 = vsel %vm66_vm1, %v398_v15, -inf }
  0x90   :  { %109 = vmax.xlane.f32.xlu1 %v108_v16 }
  0x92   :  { %106 = vmax.xlane.f32.xlu0 %v105_v17  ;;  %v285_v17 = vsel %vm73_vm12, 1.0, %v327_v63 }
  0xa6   :  { %88 = vperm.xlu0 %311, %v412_v18  }
  0xfd   :  { %v417_v21 = vpop.xlane.xlu0 %103 }
  0xfe   :  { %vm156_vm2 = vcmp.eq.f32.partialorder %v382_v10, %v417_v21  ;;  %v111_v42 = vsub.f32 %v382_v10, %v417_v21 }
  0xff   :  { %v159_v22 = vsel %vm156_vm2, %v415_v20, 8  ;;  %vm262_vm2 = vcmp.eq.s32.totalorder %v415_v20, 0 }
 0x100   :  { %v162_v23 = vsel %vm66_vm1, %v159_v22, 2147483647  ;;  %v114_v44 = vmul.f32 1.442695, %v111_v42  ;;  %v248_v22 = vsel %vm219_vm14, %v285_v17, 0.0 }
 0x101   :  { %v164_v24 = vshra.s32 %v162_v23, 16  ;;  %v163_v50 = vand.u32 65535, %v162_v23  ;;  %v249_v23 = vsel %vm219_vm14, %v286_v19, 0.0 }
 0x103   :  { %v423_v25 = vpop.xlane.xlu1 %109  ;;  %v166_v26 = vcvt.s32.f32 %v164_v24  ;;  %v165_v52 = vcvt.s32.f32 %v163_v50  ;;  %v287_v24 = vsel %vm75_vm13, 1.0, %v327_v63 }
 0x104   :  { %v113_v27 = vsub.f32 %v398_v15, %v423_v25  ;;  %vm158_vm3 = vcmp.eq.f32.partialorder %v398_v15, %v423_v25 }
 0x105   :  { %167 = vmin.xlane.f32.xlu1 %v166_v26  ;;  %v429_v28 = vpop.xlane.xlu0 %106  ;;  %v161_v29 = vsel %vm158_vm3, %v415_v20, 8  ;;  %vm265_vm3 = vcmp.eq.s32.totalorder %v415_v20, 1 }
 0x106   :  { %v118_v30 = vmul.f32 1.442695, %v113_v27  ;;  %vm157_vm4 = vcmp.eq.f32.partialorder %v391_v13, %v429_v28  ;;  %v192_v31 = vsel %vm66_vm1, %v161_v29, 2147483647  ;;  %v112_v43 = vsub.f32 %v391_v13, %v429_v28 }
 0x107   :  { %v194_v32 = vshra.s32 %v192_v31, 16  ;;  %v160_v33 = vsel %vm157_vm4, %v415_v20, 8  ;;  %v193_v59 = vand.u32 65535, %v192_v31  ;;  %v251_v29 = vsel %vm219_vm14, %v287_v24, 0.0 }
 0x108   :  { %314 = vpow2.f32 %v118_v30  ;;  %v177_v34 = vsel %vm66_vm1, %v160_v33, 2147483647  ;;  %v116_v45 = vmul.f32 1.442695, %v112_v43  ;;  %vm269_vm4 = vcmp.eq.s32.totalorder %v415_v20, 2 }
 0x109   :  { %v179_v35 = vshra.s32 %v177_v34, 16  ;;  %v196_v36 = vcvt.s32.f32 %v194_v32  ;;  %316 = vpow2.f32 %v114_v44  ;;  %v178_v54 = vand.u32 65535, %v177_v34 }
 0x10a   :  { %318 = vpow2.f32 %v116_v45  ;;  %v195_v62 = vcvt.s32.f32 %v193_v59 }
 0x10b   :  { %v181_v37 = vcvt.s32.f32 %v179_v35  ;;  %v180_v56 = vcvt.s32.f32 %v178_v54 }
 0x10d   :  { %197 = vmin.xlane.f32.xlu1 %v196_v36  ;;  %182 = vmin.xlane.f32.xlu2 %v181_v37 }
 0x10e   :  { %v315_v38 = vpop.eup %314 }
 0x10f   :  { %v126_v39 = vsel %vm66_vm1, %v315_v38, 0.0  ;;  %v317_v46 = vpop.eup %316 }
 0x110   :  { %127 = vadd.xlane.f32.xlu0 %v126_v39  ;;  %v319_v47 = vpop.eup %318  ;;  %v120_v48 = vsel %vm66_vm1, %v317_v46, 0.0 }
 0x111   :  { %v123_v49 = vsel %vm66_vm1, %v319_v47, 0.0 }
 0x118   :  { %v89_v60 = vpop.permute.xlu0 %88 }
 0x119   :  { %vm94_vm8 = vcmp.eq.s32.totalorder %v415_v20, %v89_v60 }
 0x11a   :  { %v289_v2 = vsel %vm94_vm8, 1.0, %v327_v63 }
 0x11b   :  { %v139_v5 = vmul.f32 %v289_v2, %v391_v13 }
 0x11d   :  { %v144_v6 = vsel %vm66_vm1, %v139_v5, 0.0 }
 0x125   :  { %85 = vperm.xlu2 %310, %v441_v40  }
 0x126   :  { %91 = vperm.xlu1 %312, %v446_v41  }
 0x14e   :  { %121 = vadd.xlane.f32.xlu2 %v120_v48 }
 0x150   :  { %124 = vadd.xlane.f32.xlu1 %v123_v49 }
 0x178   :  { %v168_v51 = vpop.xlane.xlu1 %167 }
 0x179   :  { %vm169_vm5 = vcmp.eq.f32.partialorder %v166_v26, %v168_v51  ;;  %v250_v26 = vadd.f32 %v249_v23, %v248_v22 }
 0x17a   :  { %v170_v53 = vsel %vm169_vm5, %v165_v52, inf }
 0x17b   :  { %171 = vmin.xlane.f32.xlu2 %v170_v53  ;;  %v252_v30 = vadd.f32 %v251_v29, %v250_v26 }
 0x180   :  { %v183_v55 = vpop.xlane.xlu2 %182  ;;  %v198_v58 = vpop.xlane.xlu1 %197 }
 0x181   :  { %vm184_vm6 = vcmp.eq.f32.partialorder %v181_v37, %v183_v55  ;;  %vm199_vm7 = vcmp.eq.f32.partialorder %v196_v36, %v198_v58  ;;  %v189_v27 = vcvt.f32.s32 %v183_v55  ;;  %v204_v37 = vcvt.f32.s32 %v198_v58 }
 0x182   :  { %v185_v57 = vsel %vm184_vm6, %v180_v56, inf  ;;  %v200_v1 = vsel %vm199_vm7, %v195_v62, inf }
 0x183   :  { %186 = vmin.xlane.f32.xlu2 %v185_v57  ;;  %v190_v32 = vshll.u32 %v189_v27, 16  ;;  %v205_v44 = vshll.u32 %v204_v37, 16  ;;  %v128_v47 = vpop.xlane.xlu0 %127 }
 0x188   :  { %v86_v61 = vpop.permute.xlu2 %85 }
 0x189   :  { %vm93_vm9 = vcmp.eq.s32.totalorder %v415_v20, %v86_v61 }
 0x18a   :  { %v288_v0 = vsel %vm93_vm9, 1.0, %v327_v63 }
 0x18b   :  { %201 = vmin.xlane.f32.xlu2 %v200_v1  ;;  %v138_v3 = vmul.f32 %v288_v0, %v382_v10  ;;  %v174_v10 = vcvt.f32.s32 %v168_v51 }
 0x18d   :  { %v141_v4 = vsel %vm66_vm1, %v138_v3, 0.0  ;;  %v175_v14 = vshll.u32 %v174_v10, 16 }
 0x18e   :  { %142 = vadd.xlane.f32.xlu1 %v141_v4 }
 0x193   :  { %145 = vadd.xlane.f32.xlu2 %v144_v6 }
 0x198   :  { %v92_v7 = vpop.permute.xlu1 %91 }
 0x199   :  { %vm95_vm10 = vcmp.eq.s32.totalorder %v415_v20, %v92_v7 }
 0x19a   :  { %v290_v8 = vsel %vm95_vm10, 1.0, %v327_v63 }
 0x19b   :  { %v140_v9 = vmul.f32 %v290_v8, %v398_v15 }
 0x19d   :  { %v147_v11 = vsel %vm66_vm1, %v140_v9, 0.0 }
 0x19e   :  { %148 = vadd.xlane.f32.xlu0 %v147_v11 }
 0x1a6   :  { %253 = vadd.xlane.f32.xlu0 %v252_v30 }
 0x1c1   :  { %v122_v12 = vpop.xlane.xlu2 %121 }
 0x1c3   :  { %v125_v34 = vpop.xlane.xlu1 %124 }
 0x1c4   :  { %320 = vlog2.f32 %v125_v34 }
 0x1c5   :  { %322 = vlog2.f32 %v122_v12 }
 0x1c6   :  { %324 = vlog2.f32 %v128_v47 }
 0x1ca   :  { %v321_v49 = vpop.eup %320 }
 0x1cb   :  { %v323_v51 = vpop.eup %322 }
 0x1cc   :  { %v130_v54 = vmul.f32 0.6931472, %v323_v51  ;;  %v325_v59 = vpop.eup %324 }
 0x1cd   :  { %v134_v0 = vmul.f32 0.6931472, %v325_v59 }
 0x1ce   :  { %v135_v61 = vadd.f32 %v130_v54, %v417_v21 }
 0x1ee   :  { %v172_v13 = vpop.xlane.xlu2 %171 }
 0x1ef   :  { %v173_v16 = vcvt.f32.s32 %v172_v13 }
 0x1f1   :  { %v176_v15 = vadd.s32 %v175_v14, %v173_v16 }
 0x1f3   :  { %vm207_vm15 = vcmp.eq.s32.totalorder %v176_v15, %v441_v40 }
 0x1f4   :  { %v291_v35 = vsel %vm207_vm15, 1.0, %v327_v63 }
 0x1f5   :  { %v216_v38 = vmul.f32 %v291_v35, %v285_v17 }
 0x1f6   :  { %v187_v31 = vpop.xlane.xlu2 %186 }
 0x1f7   :  { %v188_v33 = vcvt.f32.s32 %v187_v31  ;;  %v234_v45 = vsel %vm219_vm14, %v216_v38, 0.0 }
 0x1f9   :  { %v191_v36 = vadd.s32 %v190_v32, %v188_v33 }
 0x1fb   :  { %vm208_vm0 = vcmp.eq.s32.totalorder %v191_v36, %v412_v18  ;;  %v132_v18 = vmul.f32 0.6931472, %v321_v49 }
 0x1fc   :  { %v292_v39 = vsel %vm208_vm0, 1.0, %v327_v63 }
 0x1fd   :  { %v217_v42 = vmul.f32 %v292_v39, %v286_v19  ;;  %v136_v57 = vadd.f32 %v132_v18, %v429_v28 }
 0x1fe   :  { %v202_v43 = vpop.xlane.xlu2 %201 }
 0x1ff   :  { %v203_v40 = vcvt.f32.s32 %v202_v43  ;;  %v235_v46 = vsel %vm219_vm14, %v217_v42, 0.0 }
 0x200   :  { %v236_v48 = vadd.f32 %v235_v46, %v234_v45 }
 0x201   :  { %v206_v50 = vadd.s32 %v205_v44, %v203_v40  ;;  %v143_v60 = vpop.xlane.xlu1 %142 }
 0x202   :  { %v150_v1 = vsub.f32 %v135_v61, %v143_v60 }
 0x203   :  { %vm209_vm1 = vcmp.eq.s32.totalorder %v206_v50, %v446_v41 }
 0x204   :  { %v293_v52 = vsel %vm209_vm1, 1.0, %v327_v63  ;;  %v153_v2 = vmul.f32 %v285_v17, %v150_v1  ;;  %v137_v63 = vadd.f32 %v134_v0, %v423_v25 }
 0x205   :  { %v218_v53 = vmul.f32 %v293_v52, %v287_v24 }
 0x206   :  { %v146_v55 = vpop.xlane.xlu2 %145  ;;  %v220_v28 = vsel %vm219_vm14, %v153_v2, 0.0 }
 0x207   :  { %v237_v56 = vsel %vm219_vm14, %v218_v53, 0.0  ;;  %v151_v62 = vsub.f32 %v136_v57, %v146_v55 }
 0x208   :  { %v238_v58 = vadd.f32 %v237_v56, %v236_v48 }
 0x209   :  { %v154_v41 = vmul.f32 %v286_v19, %v151_v62 }
 0x20a   :  { %239 = vadd.xlane.f32.xlu2 %v238_v58 }
 0x20b   :  { %v221_v5 = vsel %vm219_vm14, %v154_v41, 0.0 }
 0x20c   :  { %v222_v7 = vadd.f32 %v221_v5, %v220_v28 }
 0x211   :  { %v149_v3 = vpop.xlane.xlu0 %148 }
 0x212   :  { %v152_v4 = vsub.f32 %v137_v63, %v149_v3 }
 0x214   :  { %v155_v6 = vmul.f32 %v287_v24, %v152_v4 }
 0x216   :  { %v223_v8 = vsel %vm219_vm14, %v155_v6, 0.0 }
 0x217   :  { %v224_v9 = vadd.f32 %v223_v8, %v222_v7 }
 0x219   :  { %225 = vadd.xlane.f32.xlu1 %v224_v9  ;;  %v254_v11 = vpop.xlane.xlu0 %253 }
 0x21a   :  { %v255_v10 = vrot.slane %v254_v11, 4 }
 0x21c   :  { %v256_v14 = vadd.f32 %v255_v10, %v254_v11 }
 0x21e   :  { %v257_v17 = vrot.slane %v256_v14, 2 }
 0x220   :  { %v258_v23 = vadd.f32 %v257_v17, %v256_v14 }
 0x222   :  { %v259_v30 = vrot.slane %v258_v23, 1 }
 0x224   :  { %v260_v33 = vadd.f32 %v259_v30, %v258_v23 }
 0x27d   :  { %v240_v21 = vpop.xlane.xlu2 %239 }
 0x27e   :  { %v241_v12 = vrot.slane %v240_v21, 4 }
 0x280   :  { %v242_v13 = vadd.f32 %v241_v12, %v240_v21 }
 0x282   :  { %v243_v16 = vrot.slane %v242_v13, 2 }
 0x284   :  { %v244_v22 = vadd.f32 %v243_v16, %v242_v13 }
 0x286   :  { %v245_v27 = vrot.slane %v244_v22, 1 }
 0x288   :  { %v246_v32 = vadd.f32 %v245_v27, %v244_v22 }
 0x28c   :  { %v226_v25 = vpop.xlane.xlu1 %225 }
 0x28d   :  { %v227_v19 = vrot.slane %v226_v25, 4 }
 0x28f   :  { %v228_v15 = vadd.f32 %v227_v19, %v226_v25 }
 0x291   :  { %v229_v24 = vrot.slane %v228_v15, 2 }
 0x293   :  { %v230_v26 = vadd.f32 %v229_v24, %v228_v15 }
 0x295   :  { %v231_v29 = vrot.slane %v230_v26, 1 }
 0x297   :  { %v232_v31 = vadd.f32 %v231_v29, %v230_v26 }
 0x299   :  { %302 = vpush %v232_v31 }
 0x29a   :  { %304 = vpush %v246_v32 }
 0x29b   :  { %306 = vpush %v260_v33 }
 0x2ca   :  { %s303_s3 = spop %302 }
 0x2cb   :  { %v263_v34 = vstv %s303_s3  ;;  %s305_s17 = spop %304 }
 0x2cc   :  { %v264_v35 = vsel %vm262_vm2, %v263_v34, 0.0  ;;  %v266_v36 = vstv %s305_s17  ;;  %s307_s18 = spop %306 }
 0x2cd   :  { %v267_v37 = vsel %vm265_vm3, %v266_v36, 0.0  ;;  %v270_v38 = vstv %s307_s18 }
 0x2ce   :  { %v268_v39 = vadd.f32 %v267_v37, %v264_v35  ;;  %v271_v42 = vsel %vm269_vm4, %v270_v38, 0.0 }
 0x2d0   :  { %v272_v43 = vadd.f32 %v271_v42, %v268_v39 }
 0x2d2   :  { %273 = vst [vmem:[%s503_s5] sm:$0x1] %v272_v43 }

</bundles_post_ra>
